<compile_context>
chip_gen: v5e
topology: v5e:2x2
jax: 0.10.0
libtpu: 0.0.40
codegen_flags: <defaults>
</compile_context>

<pallas_src>
import functools

import jax
import jax.numpy as jnp
from jax.experimental import pallas as pl
from jax.experimental.pallas import tpu as pltpu


# --------------------------------------------------------------------------
# Standalone `attention` module (the spec) as a single fused kernel.
# --------------------------------------------------------------------------
def attention_kernel(dec_h_ref, enc_ref, wc_ref, wd_ref, b_ref, out_ref):
    dec_h = dec_h_ref[...]                                    # (B, H)
    enc = enc_ref[...]                                        # (B, T_enc, H)
    B, H = dec_h.shape
    # torch: attn_scores = bmm(enc.permute(1,0,2), dec_h[:, :, None]) -> (B, T_enc)
    scores = jnp.einsum('bqd,bkd->bqk', dec_h[:, None, :], enc,
                        preferred_element_type=jnp.float32)   # (B, 1, T_enc)
    # torch: softmax(attn_scores, dim=0)  == softmax over the batch axis
    m = jnp.max(scores, axis=0, keepdims=True)
    e = jnp.exp(scores - m)
    wgt = e / jnp.sum(e, axis=0, keepdims=True)
    # torch: context = bmm(w[:, None, :], enc.permute(1,0,2)) -> (B, H)
    ctx = jnp.einsum('bqk,bkd->bqd', wgt, enc,
                     preferred_element_type=jnp.float32).reshape(B, H)
    # cat([ctx, dec_h], 1) @ W  ==  ctx @ W_ctx + dec_h @ W_dec   (no lane concat)
    out_ref[...] = jnp.tanh(
        jnp.dot(ctx, wc_ref[...], preferred_element_type=jnp.float32)
        + jnp.dot(dec_h, wd_ref[...], preferred_element_type=jnp.float32)
        + b_ref[...])


def attention_forward(decoder_hidden, encoder_outputs, params):
    B, H = decoder_hidden.shape
    enc_bth = jnp.transpose(encoder_outputs, (1, 0, 2))       # (B, T_enc, H), once
    return pl.pallas_call(
        attention_kernel,
        out_shape=jax.ShapeDtypeStruct((B, H), jnp.float32),
    )(decoder_hidden, enc_bth, params["attn_wc"], params["attn_wd"],
      params["attn_b"])


# --------------------------------------------------------------------------
# Fully-fused decoder forward: attention -> GRU stack -> vocab proj/softmax,
# all inside one pallas_call.
# --------------------------------------------------------------------------
def _make_decoder_kernel(num_layers):
    L = num_layers

    def kernel(*refs):
        it = iter(refs)
        seq_ref = next(it)      # (T, B, E)   embedded inputs
        enc_ref = next(it)      # (B, T_enc, H)
        h0_ref = next(it)       # (L, B, H)
        wc_ref = next(it)       # (H, H)  attention linear, context half
        wd_ref = next(it)       # (H, H)  attention linear, decoder-hidden half
        ab_ref = next(it)       # (1, H)
        layer_refs = []
        for l in range(L):
            n = 5 if l == 0 else 4
            layer_refs.append(tuple(next(it) for _ in range(n)))
        cw_ref = next(it)       # (H, V_pad)
        cb_ref = next(it)       # (1, V_pad)
        out_ref = next(it)      # (B, T, V_pad)   logits
        hid_ref = next(it)      # (L, B, H)
        pos_ref = next(it)      # (B, T, V_pad)   softmax probs
        y_buf = next(it)        # VMEM scratch (T, B, H) — per-layer hidden sequence

        T, B, E = seq_ref.shape
        H = h0_ref.shape[2]
        f32 = jnp.float32

        # ---------------- attention (exact torch semantics, softmax over dim=0)
        enc = enc_ref[...]
        dec_h = h0_ref[L - 1]
        scores = jnp.einsum('bqd,bkd->bqk', dec_h[:, None, :], enc,
                            preferred_element_type=f32)        # (B, 1, T_enc)
        m = jnp.max(scores, axis=0, keepdims=True)
        e = jnp.exp(scores - m)
        wgt = e / jnp.sum(e, axis=0, keepdims=True)
        ctx = jnp.einsum('bqk,bkd->bqd', wgt, enc,
                         preferred_element_type=f32).reshape(B, H)
        attn_out = jnp.tanh(
            jnp.dot(ctx, wc_ref[...], preferred_element_type=f32)
            + jnp.dot(dec_h, wd_ref[...], preferred_element_type=f32)
            + ab_ref[...])                                      # (B, H)

        # ---------------- GRU stack (gate order [r | z | n], PyTorch GRU math)
        x2d = seq_ref[...].reshape(T * B, E)                    # rows are t-major
        for l in range(L):
            if l == 0:
                w_ie, w_ia, b_i, w_h, b_h = layer_refs[l]
                # Input = cat([emb_t, attn_out]); the concat/broadcast is folded
                # into split weights; the attention part is computed once, not T×.
                gx = [jnp.dot(x2d, w_ie[g], preferred_element_type=f32)
                      .reshape(T, B, H)
                      + (jnp.dot(attn_out, w_ia[g], preferred_element_type=f32)
                         + b_i[g])[None]
                      for g in range(3)]
            else:
                w_i, b_i, w_h, b_h = layer_refs[l]
                gx = [jnp.dot(x2d, w_i[g], preferred_element_type=f32)
                      .reshape(T, B, H)
                      + b_i[g][None]
                      for g in range(3)]
            gx_r, gx_z, gx_n = gx
            # Hoist recurrent weights/biases out of the unrolled time loop.
            wh_r, wh_z, wh_n = w_h[0], w_h[1], w_h[2]
            bh_r, bh_z, bh_n = b_h[0], b_h[1], b_h[2]
            h = h0_ref[l]
            for t in range(T):                                  # T small: full unroll
                gh_r = jnp.dot(h, wh_r, preferred_element_type=f32) + bh_r
                gh_z = jnp.dot(h, wh_z, preferred_element_type=f32) + bh_z
                gh_n = jnp.dot(h, wh_n, preferred_element_type=f32) + bh_n
                r = jax.nn.sigmoid(gx_r[t] + gh_r)
                z = jax.nn.sigmoid(gx_z[t] + gh_z)
                n = jnp.tanh(gx_n[t] + r * gh_n)                # b_hn stays inside r*(...)
                h = (1.0 - z) * n + z * h
                y_buf[t] = h
            hid_ref[l] = h
            x2d = y_buf[...].reshape(T * B, H)                  # input to next layer

        # ---------------- vocab projection + softmax (lane-dense V_pad columns)
        logits = jnp.dot(x2d, cw_ref[...], preferred_element_type=f32) + cb_ref[...]
        mx = jnp.max(logits, axis=-1, keepdims=True)
        ex = jnp.exp(logits - mx)                               # padded cols -> exactly 0
        probs = ex / jnp.sum(ex, axis=-1, keepdims=True)
        # Emit directly in (B, T, V_pad) layout; rows of `logits` are t-major.
        for t in range(T):
            out_ref[:, t:t + 1, :] = logits[t * B:(t + 1) * B][:, None, :]
            pos_ref[:, t:t + 1, :] = probs[t * B:(t + 1) * B][:, None, :]

    return kernel


def decoder_forward(input_seq, state, encoder_outputs, params, *, vocab_size):
    if input_seq.ndim == 3:
        input_seq = input_seq.reshape(-1, input_seq.shape[2])
    num_layers = len(params["gru"])
    emb = jnp.take(params["embedding"], input_seq, axis=0)      # (B, T, E)
    seq = jnp.transpose(emb, (1, 0, 2))                         # (T, B, E) tiny
    enc_bth = jnp.transpose(encoder_outputs, (1, 0, 2))         # (B, T_enc, H) tiny
    T, B, _ = seq.shape
    H = state.shape[-1]
    V_pad = params["com_w"].shape[1]

    inputs = [seq, enc_bth, state,
              params["attn_wc"], params["attn_wd"], params["attn_b"]]
    for l, lp in enumerate(params["gru"]):
        if l == 0:
            inputs += [lp["w_ie"], lp["w_ia"], lp["b_i"], lp["w_h"], lp["b_h"]]
        else:
            inputs += [lp["w_i"], lp["b_i"], lp["w_h"], lp["b_h"]]
    inputs += [params["com_w"], params["com_b"]]

    out_p, hidden, pos_p = pl.pallas_call(
        _make_decoder_kernel(num_layers),
        out_shape=(jax.ShapeDtypeStruct((B, T, V_pad), jnp.float32),
                   jax.ShapeDtypeStruct((num_layers, B, H), jnp.float32),
                   jax.ShapeDtypeStruct((B, T, V_pad), jnp.float32)),
        scratch_shapes=[pltpu.VMEM((T, B, H), jnp.float32)],
    )(*inputs)

    # TODO(synk): the reference also samples words via np.random.choice(p=pos_word)
    # and a word2vec index_to_key lookup (host-side, non-deterministic); no Pallas
    # equivalent, so the "sentence" output is omitted.
    return out_p[..., :vocab_size], hidden, pos_p[..., :vocab_size]


# --------------------------------------------------------------------------
# Parameters (already laid out in kernel-friendly shapes: gate-major GRU
# weights, split attention linear, padded vocab projection).
# --------------------------------------------------------------------------
def init_params(key, vocab_size, hidden_size, emb_size, layer_num):
    H, E, V = hidden_size, emb_size, vocab_size
    ks = iter(jax.random.split(key, 32))
    nxt = lambda: next(ks)
    u = lambda shape, k: jax.random.uniform(nxt(), shape, jnp.float32, -k, k)

    p = {}
    p["embedding"] = jax.random.normal(nxt(), (V, E), jnp.float32)
    ka = (2.0 * H) ** -0.5
    p["attn_wc"] = u((H, H), ka)          # context half of the (2H,H) linear
    p["attn_wd"] = u((H, H), ka)          # decoder-hidden half
    p["attn_b"] = u((1, H), ka)

    kh = H ** -0.5
    gru = []
    for l in range(layer_num):
        if l == 0:
            lp = {"w_ie": u((3, E, H), kh),     # gate-major [r, z, n]
                  "w_ia": u((3, H, H), kh)}
        else:
            lp = {"w_i": u((3, H, H), kh)}
        lp.update({"b_i": u((3, 1, H), kh),
                   "w_h": u((3, H, H), kh),
                   "b_h": u((3, 1, H), kh)})
        gru.append(lp)
    p["gru"] = gru

    V_pad = ((V + 127) // 128) * 128
    w = u((H, V), kh)
    b = u((1, V), kh)
    # Padded logits get bias -1e30 -> exp underflows to exactly 0; softmax unchanged.
    p["com_w"] = jnp.pad(w, ((0, 0), (0, V_pad - V)))
    p["com_b"] = jnp.pad(b, ((0, 0), (0, V_pad - V)), constant_values=-1e30)
    return p


# --------------------------------------------------------------------------
if __name__ == "__main__":
    B, T, T_ENC = 2, 8, 8
    HIDDEN, EMB, VOCAB, LAYERS = 32, 16, 64, 2

    key = jax.random.PRNGKey(0)
    kp, ki, ks, ke = jax.random.split(key, 4)

    params = init_params(kp, VOCAB, HIDDEN, EMB, LAYERS)
    input_seq = jax.random.randint(ki, (B, T), 0, VOCAB, dtype=jnp.int32)
    state = 0.1 * jax.random.normal(ks, (LAYERS, B, HIDDEN), jnp.float32)
    encoder_outputs = 0.1 * jax.random.normal(ke, (T_ENC, B, HIDDEN), jnp.float32)

    # Standalone `attention` module (the spec), one fused kernel.
    attn_fn = jax.jit(attention_forward)
    attn_out = attn_fn(state[-1], encoder_outputs, params)
    jax.block_until_ready(attn_out)
    assert attn_out.shape == (B, HIDDEN)

    # Fully-fused decoder forward: exactly one pallas_call.
    fwd = jax.jit(functools.partial(decoder_forward, vocab_size=VOCAB))
    output, hidden, pos_word = fwd(input_seq, state, encoder_outputs, params)
    jax.block_until_ready((output, hidden, pos_word))

    assert output.shape == (B, T, VOCAB)
    assert hidden.shape == (LAYERS, B, HIDDEN)
    assert pos_word.shape == (B, T, VOCAB)
    # softmax rows must sum to 1 (padded columns contribute exactly 0)
    assert float(jnp.max(jnp.abs(jnp.sum(pos_word, axis=-1) - 1.0))) < 1e-3

    print("KERNEL_OK")
</pallas_src>

<mosaic_0001>
module attributes {stable_mosaic.version = 11 : i64} {
  func.func @attention_kernel(%arg0: memref<2x32xf32, #tpu.memory_space<vmem>>, %arg1: memref<2x8x32xf32, #tpu.memory_space<vmem>>, %arg2: memref<32x32xf32, #tpu.memory_space<vmem>>, %arg3: memref<32x32xf32, #tpu.memory_space<vmem>>, %arg4: memref<1x32xf32, #tpu.memory_space<vmem>>, %arg5: memref<2x32xf32, #tpu.memory_space<vmem>>) attributes {dimension_semantics = [], scalar_prefetch = 0 : i64, scratch_operands = 0 : i64, tpu.core_type = #tpu.core_type<tc>} {
    %c0 = arith.constant 0 : index
    %c0_0 = arith.constant 0 : index
    %0 = vector.load %arg0[%c0, %c0_0] : memref<2x32xf32, #tpu.memory_space<vmem>>, vector<2x32xf32>
    %c0_1 = arith.constant 0 : index
    %c0_2 = arith.constant 0 : index
    %c0_3 = arith.constant 0 : index
    %1 = vector.load %arg1[%c0_1, %c0_2, %c0_3] : memref<2x8x32xf32, #tpu.memory_space<vmem>>, vector<2x8x32xf32>
    %2 = vector.shape_cast %0 : vector<2x32xf32> to vector<2x1x32xf32>
    "tpu.trace_start"() <{level = 10 : i32, message = "bqd,bkd->bqk"}> : () -> ()
    %cst = arith.constant dense<0.000000e+00> : vector<2x1x8xf32>
    %3 = tpu.matmul %2, %1, %cst {dimension_numbers = #tpu.dot_dimension_numbers<[2], [2], [1], [1], [0, 0, 0, 1, 1, 1], [0], [0]>} : vector<2x1x32xf32>, vector<2x8x32xf32>, vector<2x1x8xf32> -> vector<2x1x8xf32>
    "tpu.trace_stop"() : () -> ()
    %cst_4 = arith.constant dense<0xFF800000> : vector<1x8xf32>
    %4 = vector.multi_reduction <maximumf>, %3, %cst_4 [0] : vector<2x1x8xf32> to vector<1x8xf32>
    %5 = vector.shape_cast %4 : vector<1x8xf32> to vector<1x1x8xf32>
    %6 = vector.broadcast %5 : vector<1x1x8xf32> to vector<2x1x8xf32>
    %7 = arith.subf %3, %6 : vector<2x1x8xf32>
    %8 = math.exp %7 : vector<2x1x8xf32>
    %cst_5 = arith.constant dense<0.000000e+00> : vector<1x8xf32>
    %9 = vector.multi_reduction <add>, %8, %cst_5 [0] : vector<2x1x8xf32> to vector<1x8xf32>
    %10 = vector.shape_cast %9 : vector<1x8xf32> to vector<1x1x8xf32>
    %11 = vector.broadcast %10 : vector<1x1x8xf32> to vector<2x1x8xf32>
    %12 = arith.divf %8, %11 : vector<2x1x8xf32>
    "tpu.trace_start"() <{level = 10 : i32, message = "bqk,bkd->bqd"}> : () -> ()
    %cst_6 = arith.constant dense<0.000000e+00> : vector<2x1x32xf32>
    %13 = tpu.matmul %12, %1, %cst_6 {dimension_numbers = #tpu.dot_dimension_numbers<[2], [1], [1], [2], [0, 0, 0, 1, 1, 2], [0], [0]>} : vector<2x1x8xf32>, vector<2x8x32xf32>, vector<2x1x32xf32> -> vector<2x1x32xf32>
    "tpu.trace_stop"() : () -> ()
    %14 = vector.shape_cast %13 : vector<2x1x32xf32> to vector<2x32xf32>
    %c0_7 = arith.constant 0 : index
    %c0_8 = arith.constant 0 : index
    %15 = vector.load %arg2[%c0_7, %c0_8] : memref<32x32xf32, #tpu.memory_space<vmem>>, vector<32x32xf32>
    %cst_9 = arith.constant dense<0.000000e+00> : vector<2x32xf32>
    %16 = tpu.matmul %14, %15, %cst_9 {dimension_numbers = #tpu.dot_dimension_numbers<[1], [0], [0], [1], [0, 0, 1, 1], [], []>} : vector<2x32xf32>, vector<32x32xf32>, vector<2x32xf32> -> vector<2x32xf32>
    %c0_10 = arith.constant 0 : index
    %c0_11 = arith.constant 0 : index
    %17 = vector.load %arg3[%c0_10, %c0_11] : memref<32x32xf32, #tpu.memory_space<vmem>>, vector<32x32xf32>
    %cst_12 = arith.constant dense<0.000000e+00> : vector<2x32xf32>
    %18 = tpu.matmul %0, %17, %cst_12 {dimension_numbers = #tpu.dot_dimension_numbers<[1], [0], [0], [1], [0, 0, 1, 1], [], []>} : vector<2x32xf32>, vector<32x32xf32>, vector<2x32xf32> -> vector<2x32xf32>
    %19 = arith.addf %16, %18 : vector<2x32xf32>
    %c0_13 = arith.constant 0 : index
    %c0_14 = arith.constant 0 : index
    %20 = vector.load %arg4[%c0_13, %c0_14] : memref<1x32xf32, #tpu.memory_space<vmem>>, vector<1x32xf32>
    %21 = vector.broadcast %20 : vector<1x32xf32> to vector<2x32xf32>
    %22 = arith.addf %19, %21 : vector<2x32xf32>
    %23 = math.tanh %22 : vector<2x32xf32>
    %c0_15 = arith.constant 0 : index
    %c0_16 = arith.constant 0 : index
    %24 = vector.load %arg5[%c0_15, %c0_16] : memref<2x32xf32, #tpu.memory_space<vmem>>, vector<2x32xf32>
    tpu.vector_store %arg5[%c0_15, %c0_16], %23 {strides = array<i32>} : memref<2x32xf32, #tpu.memory_space<vmem>>, vector<2x32xf32>,
    return
  }
}

</mosaic_0001>

<bundles_post_ra>
// kernel: attention_forward.1
= control target key start
LH: loop header
LB: loop body
LE: loop exit
PB: predicated region body
PF: predicated region fallthrough
CT: control target
= control target key end

     0   :  { %10 = vsyncpa [#allocation3], 0  ;;  %s439_s0 = inlined_call_operand.vmem [shape: f32[2,32], index: 0, kind: input, shape index: {}]   ;;  %s440_s1 = inlined_call_operand.vmem [shape: f32[2,8,32], index: 1, kind: input, shape index: {}]   ;;  %s441_s2 = inlined_call_operand.vmem [shape: f32[32,32], index: 2, kind: input, shape index: {}]   ;;  %s442_s3 = inlined_call_operand.hbm [shape: f32[32,32], index: 3, kind: input, shape index: {}]   ;;  %s443_s4 = inlined_call_operand.hbm [shape: f32[1,32], index: 4, kind: input, shape index: {}]   ;;  %s444_s5 = inlined_call_operand.hbm [shape: f32[2,32], index: 5, kind: output, shape index: {}]  }
   0x1   :  { %11 = vsyncpa [#allocation6], 0 }
   0x2   :  { %12 = vsyncpa [#allocation4], 0  ;;  %s23_s20 = sshll.u32 %s442_s3, 4  ;;  %s364_s21 = smov [#allocation2]   ;;  %s24_s20 = int_to_ptr.hbm [resolvable:$true] %s23_s20 }
   0x3   :  { %s25_s22 = sshll.u32 %s364_s21, 4  ;;  %s37_s25 = sshll.u32 %s443_s4, 4  ;;  %s26_s22 = int_to_ptr.vmem [resolvable:$true] %s25_s22  ;;  %s38_s25 = int_to_ptr.hbm [resolvable:$true] %s37_s25 }
   0x4   :  { %s365_s26 = smov 128   ;;  %s366_s27 = smov 8  }
   0x5   :  { %31 = dma.hbm_to_vmem [thread:$0]  %s24_s20, 512, %s26_s22, [#allocation3], %s365_s26, %s365_s26, %s366_s27  }
   0x6   :  { %s367_s28 = smov [#allocation5]  }
   0x7   :  { %s39_s29 = sshll.u32 %s367_s28, 4  ;;  %s40_s29 = int_to_ptr.vmem [resolvable:$true] %s39_s29 }
   0x8   :  { %42 = dma.hbm_to_vmem [thread:$0]  %s38_s25, 16, %s40_s29, [#allocation6]  }
   0x9   :  { %358 = dma.done.wait [#allocation3], 512  }
   0xa   :  { %359 = vsyncadd [#allocation3], 4294966784 }
   0xb   :  { %360 = dma.done.wait [#allocation6], 16  }
   0xc   :  { %361 = vsyncadd [#allocation6], 4294967280  ;;  %vm56_vm0 = vcmask 261120   ;;  %v52_v0 = vld [vmem:[%s440_s1] sm:$0xff]  ;;  %v53_v1 = vld [vmem:[%s440_s1 + $0x8] sm:$0xff]  ;;  %vm107_vm1 = vcmask 57344  }
   0xd   :  { %v51_v2 = vld [vmem:[%s439_s0] sm:$0x3]  ;;  %264 = vmatpush.xpose.msk.msra.mxu0 %vm56_vm0, %v52_v0  ;;  %266 = vmatpush.xpose.msk.msra.mxu1 %vm56_vm0, %v53_v1  ;;  %v190_v13 = vld [vmem:[#allocation2 + $0x18] sm:$0xff]  ;;  %v189_v15 = vld [vmem:[#allocation2 + $0x10] sm:$0xff]  ;;  %vm136_vm6 = vcmask 64512   ;;  %vm214_vm7 = vcmask 1041409  }
   0xe   :  { %v55_v3 = vrot.slane %v51_v2, 1  ;;  %155 = vmatpush.msra.mxu2 %v52_v0  ;;  %178 = vmatpush.msra.mxu3 %v53_v1  ;;  %v186_v14 = vld [vmem:[%s441_s2 + $0x18] sm:$0xff]  ;;  %v185_v16 = vld [vmem:[%s441_s2 + $0x10] sm:$0xff]  ;;  %v188_v34 = vld [vmem:[#allocation2 + $0x8] sm:$0xff]  ;;  %s368_s15 = smov [#allocation7]   ;;  %s253_s18 = sshll.u32 %s444_s5, 4  ;;  %s254_s18 = int_to_ptr.hbm [resolvable:$true] %s253_s18 }
   0xf   :  { %v184_v35 = vld [vmem:[%s441_s2 + $0x8] sm:$0xff]  ;;  %v187_v36 = vld [vmem:[#allocation2] sm:$0xff]  ;;  %s251_s16 = sshll.u32 %s368_s15, 4  ;;  %vm244_vm8 = vcmask 254976   ;;  %s252_s16 = int_to_ptr.vmem [resolvable:$true] %s251_s16 }
  0x10   :  { %265 = vmatmul.msk.f32.vlgmr.msra.gmra.mxu0 %vm56_vm0, %v51_v2  ;;  %267 = vmatmul.msk.f32.vlgmr.msra.gmra.mxu1 %vm56_vm0, %v55_v3  ;;  %v183_v37 = vld [vmem:[%s441_s2] sm:$0xff] }
  0x11   :  { %203 = vmatpush.msrb.mxu2 %v190_v13  ;;  %230 = vmatpush.msrb.mxu3 %v186_v14  ;;  %v277_v43 = vld [vmem:[#allocation5] ss:$0 sm:$0xff] }
  0x13   :  { %204 = vmatpush.msrb.mxu2 %v189_v15  ;;  %231 = vmatpush.msrb.mxu3 %v185_v16 }
  0x15   :  { %205 = vmatpush.msrb.mxu2 %v188_v34  ;;  %232 = vmatpush.msrb.mxu3 %v184_v35 }
  0x17   :  { %206 = vmatpush.msrb.mxu2 %v187_v36  ;;  %233 = vmatpush.msrb.mxu3 %v183_v37 }
  0x8d   :  { %v79_v4 = vpop.f32.mrf.mxu0  ;;  %v104_v5 = vpop.f32.mrf.mxu1 }
  0x8e   :  { %v108_v6 = vsel %vm107_vm1, %v79_v4, -inf  ;;  %v109_v7 = vsel %vm107_vm1, %v104_v5, -inf }
  0x8f   :  { %v110_v8 = vmax.f32 %v108_v6, %v109_v7 }
  0x91   :  { %v111_v9 = vsub.f32 %v79_v4, %v110_v8  ;;  %v112_v10 = vsub.f32 %v104_v5, %v110_v8 }
  0x93   :  { %v113_v11 = vmul.f32 1.442695, %v111_v9  ;;  %v115_v12 = vmul.f32 1.442695, %v112_v10 }
  0x95   :  { %278 = vpow2.f32 %v113_v11 }
  0x96   :  { %280 = vpow2.f32 %v115_v12 }
  0x9b   :  { %v279_v17 = vpop.eup %278 }
  0x9c   :  { %v281_v18 = vpop.eup %280  ;;  %v117_v19 = vsel %vm107_vm1, %v279_v17, 0.0 }
  0x9d   :  { %v118_v20 = vsel %vm107_vm1, %v281_v18, 0.0 }
  0x9e   :  { %v119_v21 = vadd.f32 %v118_v20, %v117_v19 }
  0xa0   :  { %282 = vrcp.f32 %v119_v21  ;;  %v131_v25 = vand.u32 2147483648, %v119_v21  ;;  %v129_v27 = vand.u32 2147483647, %v119_v21  ;;  %vm125_vm3 = vweird.f32 %v119_v21 }
  0xa2   :  { %v132_v29 = vor.u32 1.1754944e-38, %v131_v25  ;;  %vm130_vm5 = vcmp.eq.f32.partialorder %v129_v27, 8.507059e+37 }
  0xa6   :  { %v283_v22 = vpop.eup %282 }
  0xa7   :  { %v121_v23 = vmul.f32 %v283_v22, %v119_v21  ;;  %vm126_vm2 = vweird.f32 %v283_v22 }
  0xa8   :  { %vm127_vm4 = vmor %vm125_vm3, %vm126_vm2 }
  0xa9   :  { %v122_v24 = vsub.f32 1.0, %v121_v23 }
  0xab   :  { %v123_v26 = vmul.f32 %v283_v22, %v122_v24 }
  0xad   :  { %v124_v28 = vadd.f32 %v283_v22, %v123_v26 }
  0xaf   :  { %v128_v30 = vsel %vm127_vm4, %v283_v22, %v124_v28 }
  0xb0   :  { %v133_v31 = vsel %vm130_vm5, %v132_v29, %v128_v30 }
  0xb1   :  { %v134_v32 = vmul.f32 %v279_v17, %v133_v31  ;;  %v135_v33 = vmul.f32 %v281_v18, %v133_v31 }
  0xb3   :  { %268 = vmatmul.msk.f32.vlgmr.msra.gmra.mxu2 %vm136_vm6, %v134_v32  ;;  %269 = vmatmul.msk.f32.vlgmr.msra.gmra.mxu3 %vm136_vm6, %v135_v33 }
  0xbb   :  { %270 = vmatmul.msk.f32.vlgmr.msrb.gmra.mxu2 %vm56_vm0, %v51_v2 }
 0x136   :  { %v180_v38 = vpop.f32.mrf.mxu3  ;;  %v157_v40 = vpop.f32.mrf.mxu2 }
 0x137   :  { %v213_v39 = vrot.slane %v180_v38, 7 }
 0x139   :  { %v215_v41 = vsel %vm214_vm7, %v213_v39, %v157_v40 }
 0x13a   :  { %271 = vmatmul.msk.f32.vlgmr.msrb.gmra.mxu3 %vm56_vm0, %v215_v41 }
 0x13e   :  { %v208_v42 = vpop.f32.mrf.mxu2 }
 0x1bd   :  { %v235_v44 = vpop.f32.mrf.mxu3 }
 0x1be   :  { %v236_v45 = vadd.f32 %v235_v44, %v208_v42 }
 0x1c0   :  { %v242_v46 = vadd.f32 %v277_v43, %v236_v45 }
 0x1c2   :  { %284 = vtanh.f32 %v242_v46 }
 0x1c8   :  { %v285_v47 = vpop.eup %284 }
 0x1c9   :  { %245 = vst.msk [vmem:[#allocation7] sm:$0x3] %vm244_vm8, %v285_v47 }
 0x1ca   :  { %256 = dma.vmem_to_hbm [thread:$0]  %s252_s16, 32, %s254_s18, [#allocation4]  }
 0x1cb   :  { %362 = dma.done.wait [#allocation4], 32  }
 0x1cc   :  { %363 = vsyncadd [#allocation4], 4294967264 }
 0x1cd   :  { %261 = vsyncpa [#allocation3], 1 }
 0x1ce   :  { %262 = vsyncpa [#allocation6], 1 }
 0x1cf   :  { %263 = vsyncpa [#allocation4], 1 }

</bundles_post_ra>
